<compile_context>
chip_gen: v5e
topology: v5e:2x2
jax: 0.10.0
libtpu: 0.0.40
codegen_flags: <defaults>
</compile_context>

<pallas_src>
import functools

import jax
import jax.numpy as jnp
from jax.experimental import pallas as pl
from jax.experimental.pallas import tpu as pltpu


def _round_up(n, m):
    return ((n + m - 1) // m) * m


def _vmem_capacity_bytes():
    """Physical VMEM of the local TPU generation (64 MiB = v7x floor fallback)."""
    try:
        cap = int(pltpu.get_tpu_info().vmem_capacity_bytes)
        if cap >= 32 * 1024 * 1024:
            return cap
    except Exception:
        pass
    return 64 * 1024 * 1024


def _pick_tile(n, bytes_per_lane, max_tile=16384):
    """Largest 128-multiple lane tile that (a) fits the per-step VMEM budget and
    (b) minimises padding of n: T = round_up(ceil(n / ceil(n / cap)), 128)."""
    budget = int(_vmem_capacity_bytes() * 0.45)
    t_cap = max(128, min(max_tile, (budget // max(bytes_per_lane, 1)) // 128 * 128))
    n_al = _round_up(max(n, 1), 128)
    if n_al <= t_cap:
        return n_al
    num_tiles = -(-n_al // t_cap)
    return _round_up(-(-n_al // num_tiles), 128)


def _batch_block(B, Cout):
    """Batch elements per grid step: fill ~8 sublanes worth of output rows."""
    return max(1, min(B, 8 // max(1, Cout)))


# ----------------------------------------------------------------------------
# Kernel 1: complex mode-wise channel mixing (lane axis = flattened modes)
#   out[b, o, m] = sum_i x[b, i, m] * w[i, o, m]   (complex, 4-mult product)
# ----------------------------------------------------------------------------
def _spectral_mul_kernel(xr_ref, xi_ref, wr_ref, wi_ref, or_ref, oi_ref):
    xr = xr_ref[...]                       # (BB, Cin, T)
    xi = xi_ref[...]
    bb, cin, t = xr.shape
    cout = or_ref.shape[1]

    acc_r = jnp.zeros((bb, cout, t), jnp.float32)
    acc_i = jnp.zeros((bb, cout, t), jnp.float32)
    # Cin is small & static: unrolled VPU channel contraction, plain
    # 4-multiply complex product (only two weight streams).
    for i in range(cin):
        xri = xr[:, i:i + 1, :]            # (BB, 1, T)
        xii = xi[:, i:i + 1, :]
        wri = wr_ref[i][None]              # (1, Cout, T)
        wii = wi_ref[i][None]
        acc_r = acc_r + (xri * wri - xii * wii)
        acc_i = acc_i + (xri * wii + xii * wri)

    or_ref[...] = acc_r
    oi_ref[...] = acc_i


def spectral_multiply(xr, xi, wr, wi, *, n_modes, mode_tile):
    """xr/xi: (B, Cin, n_modes) f32; wr/wi: (Cin, Cout, M_pad) f32 (pre-padded).
    Returns two (B, Cout, n_modes) f32 arrays (real / imag of mixed modes)."""
    B, Cin, M = xr.shape
    Cout = wr.shape[1]
    M_pad = wr.shape[2]
    assert M == n_modes and M_pad % mode_tile == 0 and M_pad >= M

    BB = _batch_block(B, Cout)
    B_pad = _round_up(B, BB)
    pad = [(0, B_pad - B), (0, 0), (0, M_pad - M)]
    xr = jnp.pad(xr, pad)
    xi = jnp.pad(xi, pad)

    # Modes outer, batch inner: weight block index is constant across the inner
    # axis, so the dominant weight stream is DMA'd once per mode tile, not per
    # batch element.
    grid = (M_pad // mode_tile, B_pad // BB)
    x_spec = pl.BlockSpec((BB, Cin, mode_tile), lambda m, b: (b, 0, m))
    w_spec = pl.BlockSpec((Cin, Cout, mode_tile), lambda m, b: (0, 0, m))
    o_spec = pl.BlockSpec((BB, Cout, mode_tile), lambda m, b: (b, 0, m))
    out_sd = jax.ShapeDtypeStruct((B_pad, Cout, M_pad), jnp.float32)

    flops = 8 * B_pad * Cin * Cout * M_pad
    bytes_accessed = 4 * (2 * B_pad * Cin * M_pad       # xr, xi
                          + 2 * Cin * Cout * M_pad      # wr, wi (fetched once)
                          + 2 * B_pad * Cout * M_pad)   # out_r, out_i

    out_r, out_i = pl.pallas_call(
        _spectral_mul_kernel,
        out_shape=[out_sd, out_sd],
        grid_spec=pltpu.PrefetchScalarGridSpec(
            num_scalar_prefetch=0,
            grid=grid,
            in_specs=[x_spec, x_spec, w_spec, w_spec],
            out_specs=[o_spec, o_spec],
        ),
        compiler_params=pltpu.CompilerParams(
            dimension_semantics=("parallel", "parallel"),
            vmem_limit_bytes=int(_vmem_capacity_bytes() * 0.7),
        ),
        cost_estimate=pl.CostEstimate(
            flops=flops, transcendentals=0, bytes_accessed=bytes_accessed),
    )(xr, xi, wr, wi)
    return out_r[:B, :, :M], out_i[:B, :, :M]


# ----------------------------------------------------------------------------
# Kernel 2: per-pixel linear + add spectral branch + ReLU, NCHW kept
#   (lane axis = flattened H*W pixels; no transposes in the wrapper)
# ----------------------------------------------------------------------------
def _linear_add_relu_kernel(x_ref, w_ref, b_ref, x1_ref, o_ref):
    x = x_ref[...]                         # (BB, Cin, TP)
    x1 = x1_ref[...]                       # (BB, Cout, TP)
    w = w_ref[...]                         # (Cout, Cin)
    bb, cin, tp = x.shape
    cout = x1.shape[1]

    acc = x1 + b_ref[...][None]            # (BB, Cout, TP) + (1, Cout, 1)
    if cin <= 16:
        # Tiny contraction: unrolled VPU FMAs beat a near-empty MXU matmul
        # (the right call in particular on v5e's streaming-bound regime).
        for i in range(cin):
            acc = acc + w[:, i:i + 1][None] * x[:, i:i + 1, :]
    else:
        # Wide channels: MXU.  NOTE: on v6e/v7x one can cast w/x to bf16 here
        # (keeping preferred_element_type=f32) if the accuracy budget allows.
        acc = acc + jnp.einsum('oc,bcp->bop', w, x,
                               preferred_element_type=jnp.float32)
    o_ref[...] = jnp.maximum(acc, 0.0)


def linear_add_relu(x_ncp, lin_w, lin_b_col, x1_ncp):
    """x_ncp: (B, Cin, P); x1_ncp: (B, Cout, P) -> ReLU(W x + b + x1)."""
    B, Cin, P = x_ncp.shape
    Cout = lin_w.shape[0]

    BB = _batch_block(B, Cout)
    bytes_per_lane = 4 * 2 * (BB * Cin + 2 * BB * Cout)   # double-buffered f32
    TP = _pick_tile(P, bytes_per_lane)
    P_pad = _round_up(P, TP)
    B_pad = _round_up(B, BB)
    pad = [(0, B_pad - B), (0, 0), (0, P_pad - P)]
    x_ncp = jnp.pad(x_ncp, pad)
    x1_ncp = jnp.pad(x1_ncp, pad)

    grid = (P_pad // TP, B_pad // BB)
    flops = 2 * B_pad * Cin * Cout * P_pad + 2 * B_pad * Cout * P_pad
    bytes_accessed = 4 * (B_pad * Cin * P_pad + 2 * B_pad * Cout * P_pad
                          + Cout * Cin + Cout)

    out = pl.pallas_call(
        _linear_add_relu_kernel,
        out_shape=jax.ShapeDtypeStruct((B_pad, Cout, P_pad), jnp.float32),
        grid_spec=pltpu.PrefetchScalarGridSpec(
            num_scalar_prefetch=0,
            grid=grid,
            in_specs=[
                pl.BlockSpec((BB, Cin, TP), lambda p, b: (b, 0, p)),
                # Constant-index weight/bias blocks: copied once, then reused.
                # (At large channel widths on v7x, pipeline_mode=pl.Buffered(1)
                #  would additionally halve their VMEM footprint.)
                pl.BlockSpec((Cout, Cin), lambda p, b: (0, 0)),
                pl.BlockSpec((Cout, 1), lambda p, b: (0, 0)),
                pl.BlockSpec((BB, Cout, TP), lambda p, b: (b, 0, p)),
            ],
            out_specs=pl.BlockSpec((BB, Cout, TP), lambda p, b: (b, 0, p)),
        ),
        compiler_params=pltpu.CompilerParams(
            dimension_semantics=("parallel", "parallel"),
            vmem_limit_bytes=int(_vmem_capacity_bytes() * 0.7),
        ),
        cost_estimate=pl.CostEstimate(
            flops=flops, transcendentals=0, bytes_accessed=bytes_accessed),
    )(x_ncp, lin_w, lin_b_col, x1_ncp)
    return out[:B, :, :P]


# ----------------------------------------------------------------------------
# One-time parameter preparation (hoisted out of the jitted forward)
# ----------------------------------------------------------------------------
def prepare_fno_params(params):
    """Flatten/concat the two mode blocks, cast to f32, pad the mode axis to
    the chosen lane tile.  Runs once, outside jit."""
    w1r, w1i, w2r, w2i, lin_w, lin_b = params
    Cin, Cout, m1, m2 = w1r.shape
    Mh = m1 * m2
    M = 2 * Mh

    wr = jnp.concatenate([w1r.reshape(Cin, Cout, Mh),
                          w2r.reshape(Cin, Cout, Mh)], axis=-1).astype(jnp.float32)
    wi = jnp.concatenate([w1i.reshape(Cin, Cout, Mh),
                          w2i.reshape(Cin, Cout, Mh)], axis=-1).astype(jnp.float32)

    BB = max(1, 8 // max(1, Cout))              # nominal batch block (>= runtime BB)
    bytes_per_lane = 4 * 2 * (2 * BB * Cin + 2 * Cin * Cout + 2 * BB * Cout)
    mode_tile = _pick_tile(M, bytes_per_lane)
    M_pad = _round_up(M, mode_tile)
    if M_pad != M:
        wr = jnp.pad(wr, [(0, 0), (0, 0), (0, M_pad - M)])
        wi = jnp.pad(wi, [(0, 0), (0, 0), (0, M_pad - M)])

    return dict(
        wr=wr, wi=wi,
        lin_w=lin_w.astype(jnp.float32),
        lin_b=lin_b.reshape(Cout, 1).astype(jnp.float32),
        m1=int(m1), m2=int(m2), n_modes=int(M), mode_tile=int(mode_tile),
    )


# ----------------------------------------------------------------------------
# FNOBlock2d forward
# ----------------------------------------------------------------------------
def fno_block_forward(x, prep):
    """x: (B, Cin, H, W) float32 (NCHW); prep = prepare_fno_params(params)."""
    B, Cin, H, W = x.shape
    Cout = prep["lin_w"].shape[0]
    m1, m2 = prep["m1"], prep["m2"]
    Mh = m1 * m2
    Wf = W // 2 + 1

    x = x.astype(jnp.float32)

    # --- spectral branch (FFTs stay in XLA) ---
    x_hat = jnp.fft.rfft2(x)                               # (B, Cin, H, Wf) c64
    top = x_hat[:, :, :m1, :m2].reshape(B, Cin, Mh)
    bot = x_hat[:, :, H - m1:, :m2].reshape(B, Cin, Mh)
    x_modes = jnp.concatenate([top, bot], axis=-1)         # (B, Cin, 2*Mh)
    out_r, out_i = spectral_multiply(
        jnp.real(x_modes), jnp.imag(x_modes),
        prep["wr"], prep["wi"],
        n_modes=prep["n_modes"], mode_tile=prep["mode_tile"])
    out_c = jax.lax.complex(out_r, out_i)                  # (B, Cout, 2*Mh) c64

    out_hat = jnp.zeros((B, Cout, H, Wf), jnp.complex64)
    out_hat = out_hat.at[:, :, :m1, :m2].set(
        out_c[:, :, :Mh].reshape(B, Cout, m1, m2))
    out_hat = out_hat.at[:, :, H - m1:, :m2].set(
        out_c[:, :, Mh:].reshape(B, Cout, m1, m2))
    x1 = jnp.fft.irfft2(out_hat, s=(H, W)).astype(jnp.float32)  # (B, Cout, H, W)

    # --- linear branch + add + ReLU (Pallas kernel, NCHW kept, no transposes) ---
    out = linear_add_relu(x.reshape(B, Cin, H * W),
                          prep["lin_w"], prep["lin_b"],
                          x1.reshape(B, Cout, H * W))
    return out.reshape(B, Cout, H, W)


# ----------------------------------------------------------------------------
# Pure-JAX reference (for a correctness sanity check)
# ----------------------------------------------------------------------------
def fno_block_reference(x, params):
    w1r, w1i, w2r, w2i, lin_w, lin_b = params
    B, Cin, H, W = x.shape
    Cout = lin_w.shape[0]
    m1, m2 = w1r.shape[2], w1r.shape[3]
    Wf = W // 2 + 1

    w1 = w1r + 1j * w1i
    w2 = w2r + 1j * w2i
    x_hat = jnp.fft.rfft2(x)
    out_hat = jnp.zeros((B, Cout, H, Wf), jnp.complex64)
    out_hat = out_hat.at[:, :, :m1, :m2].set(
        jnp.einsum('bikl,iokl->bokl', x_hat[:, :, :m1, :m2], w1))
    out_hat = out_hat.at[:, :, H - m1:, :m2].set(
        jnp.einsum('bikl,iokl->bokl', x_hat[:, :, H - m1:, :m2], w2))
    x1 = jnp.fft.irfft2(out_hat, s=(H, W)).astype(jnp.float32)

    x2 = jnp.einsum('bchw,oc->bohw', x, lin_w) + lin_b[None, :, None, None]
    return jnp.maximum(x1 + x2, 0.0)


# ----------------------------------------------------------------------------
# Deterministic parameter init (mimics the module __init__ shapes)
# ----------------------------------------------------------------------------
def init_params(key, in_channels, out_channels, modes1, modes2):
    ks = jax.random.split(key, 6)
    scale = 1.0 / (in_channels * out_channels)
    wshape = (in_channels, out_channels, modes1, modes2)
    w1r = scale * jax.random.uniform(ks[0], wshape, jnp.float32)
    w1i = scale * jax.random.uniform(ks[1], wshape, jnp.float32)
    w2r = scale * jax.random.uniform(ks[2], wshape, jnp.float32)
    w2i = scale * jax.random.uniform(ks[3], wshape, jnp.float32)
    bound = 1.0 / (in_channels ** 0.5)
    lin_w = jax.random.uniform(ks[4], (out_channels, in_channels), jnp.float32,
                               -bound, bound)
    lin_b = jax.random.uniform(ks[5], (out_channels,), jnp.float32,
                               -bound, bound)
    return (w1r, w1i, w2r, w2i, lin_w, lin_b)


if __name__ == "__main__":
    B, Cin, Cout, H, W = 2, 4, 4, 16, 16
    modes1, modes2 = 4, 4

    key = jax.random.PRNGKey(0)
    kx, kp = jax.random.split(key)
    x = jax.random.normal(kx, (B, Cin, H, W), jnp.float32)
    params = init_params(kp, Cin, Cout, modes1, modes2)

    prep = prepare_fno_params(params)          # one-time weight prep (outside jit)
    fwd = jax.jit(functools.partial(fno_block_forward, prep=prep))
    out = jax.block_until_ready(fwd(x))

    ref = jax.block_until_ready(fno_block_reference(x, params))
    assert out.shape == (B, Cout, H, W)
    assert jnp.allclose(out, ref, atol=1e-4, rtol=1e-4), "mismatch vs reference"

    print("KERNEL_OK")
</pallas_src>

<mosaic_0001>
module attributes {stable_mosaic.version = 11 : i64} {
  func.func @_spectral_mul_kernel(%arg0: i32, %arg1: i32, %arg2: memref<2x4x128xf32, #tpu.memory_space<vmem>>, %arg3: memref<2x4x128xf32, #tpu.memory_space<vmem>>, %arg4: memref<4x4x128xf32, #tpu.memory_space<vmem>>, %arg5: memref<4x4x128xf32, #tpu.memory_space<vmem>>, %arg6: memref<2x4x128xf32, #tpu.memory_space<vmem>>, %arg7: memref<2x4x128xf32, #tpu.memory_space<vmem>>) attributes {dimension_semantics = [#tpu.dimension_semantics<parallel>, #tpu.dimension_semantics<parallel>], iteration_bounds = array<i64: 1, 1>, scalar_prefetch = 0 : i64, scratch_operands = 0 : i64, tpu.core_type = #tpu.core_type<tc>, window_params = [{transform_indices = @transform_0, window_bounds = array<i64: 2, 4, 128>}, {transform_indices = @transform_1, window_bounds = array<i64: 2, 4, 128>}, {transform_indices = @transform_2, window_bounds = array<i64: 4, 4, 128>}, {transform_indices = @transform_3, window_bounds = array<i64: 4, 4, 128>}, {transform_indices = @transform_4, window_bounds = array<i64: 2, 4, 128>}, {transform_indices = @transform_5, window_bounds = array<i64: 2, 4, 128>}]} {
    %c0 = arith.constant 0 : index
    %c0_0 = arith.constant 0 : index
    %c0_1 = arith.constant 0 : index
    %0 = vector.load %arg2[%c0, %c0_0, %c0_1] : memref<2x4x128xf32, #tpu.memory_space<vmem>>, vector<2x4x128xf32>
    %c0_2 = arith.constant 0 : index
    %c0_3 = arith.constant 0 : index
    %c0_4 = arith.constant 0 : index
    %1 = vector.load %arg3[%c0_2, %c0_3, %c0_4] : memref<2x4x128xf32, #tpu.memory_space<vmem>>, vector<2x4x128xf32>
    %cst = arith.constant 0.000000e+00 : f32
    %2 = vector.broadcast %cst : f32 to vector<2x4x128xf32>
    %cst_5 = arith.constant 0.000000e+00 : f32
    %3 = vector.broadcast %cst_5 : f32 to vector<2x4x128xf32>
    %4 = vector.extract_strided_slice %0 {offsets = [0, 0, 0], sizes = [2, 1, 128], strides = [1, 1, 1]} : vector<2x4x128xf32> to vector<2x1x128xf32>
    %5 = vector.extract_strided_slice %1 {offsets = [0, 0, 0], sizes = [2, 1, 128], strides = [1, 1, 1]} : vector<2x4x128xf32> to vector<2x1x128xf32>
    %c0_6 = arith.constant 0 : index
    %c0_7 = arith.constant 0 : index
    %c0_8 = arith.constant 0 : index
    %6 = vector.load %arg4[%c0_6, %c0_7, %c0_8] : memref<4x4x128xf32, #tpu.memory_space<vmem>>, vector<1x4x128xf32>
    %7 = vector.shape_cast %6 : vector<1x4x128xf32> to vector<4x128xf32>
    %8 = vector.shape_cast %7 : vector<4x128xf32> to vector<1x4x128xf32>
    %c0_9 = arith.constant 0 : index
    %c0_10 = arith.constant 0 : index
    %c0_11 = arith.constant 0 : index
    %9 = vector.load %arg5[%c0_9, %c0_10, %c0_11] : memref<4x4x128xf32, #tpu.memory_space<vmem>>, vector<1x4x128xf32>
    %10 = vector.shape_cast %9 : vector<1x4x128xf32> to vector<4x128xf32>
    %11 = vector.shape_cast %10 : vector<4x128xf32> to vector<1x4x128xf32>
    %12 = vector.broadcast %4 : vector<2x1x128xf32> to vector<2x4x128xf32>
    %13 = vector.broadcast %8 : vector<1x4x128xf32> to vector<2x4x128xf32>
    %14 = arith.mulf %12, %13 : vector<2x4x128xf32>
    %15 = vector.broadcast %5 : vector<2x1x128xf32> to vector<2x4x128xf32>
    %16 = vector.broadcast %11 : vector<1x4x128xf32> to vector<2x4x128xf32>
    %17 = arith.mulf %15, %16 : vector<2x4x128xf32>
    %18 = arith.subf %14, %17 : vector<2x4x128xf32>
    %19 = arith.addf %2, %18 : vector<2x4x128xf32>
    %20 = vector.broadcast %4 : vector<2x1x128xf32> to vector<2x4x128xf32>
    %21 = vector.broadcast %11 : vector<1x4x128xf32> to vector<2x4x128xf32>
    %22 = arith.mulf %20, %21 : vector<2x4x128xf32>
    %23 = vector.broadcast %5 : vector<2x1x128xf32> to vector<2x4x128xf32>
    %24 = vector.broadcast %8 : vector<1x4x128xf32> to vector<2x4x128xf32>
    %25 = arith.mulf %23, %24 : vector<2x4x128xf32>
    %26 = arith.addf %22, %25 : vector<2x4x128xf32>
    %27 = arith.addf %3, %26 : vector<2x4x128xf32>
    %28 = vector.extract_strided_slice %0 {offsets = [0, 1, 0], sizes = [2, 1, 128], strides = [1, 1, 1]} : vector<2x4x128xf32> to vector<2x1x128xf32>
    %29 = vector.extract_strided_slice %1 {offsets = [0, 1, 0], sizes = [2, 1, 128], strides = [1, 1, 1]} : vector<2x4x128xf32> to vector<2x1x128xf32>
    %c1 = arith.constant 1 : index
    %c0_12 = arith.constant 0 : index
    %c0_13 = arith.constant 0 : index
    %30 = vector.load %arg4[%c1, %c0_12, %c0_13] : memref<4x4x128xf32, #tpu.memory_space<vmem>>, vector<1x4x128xf32>
    %31 = vector.shape_cast %30 : vector<1x4x128xf32> to vector<4x128xf32>
    %32 = vector.shape_cast %31 : vector<4x128xf32> to vector<1x4x128xf32>
    %c1_14 = arith.constant 1 : index
    %c0_15 = arith.constant 0 : index
    %c0_16 = arith.constant 0 : index
    %33 = vector.load %arg5[%c1_14, %c0_15, %c0_16] : memref<4x4x128xf32, #tpu.memory_space<vmem>>, vector<1x4x128xf32>
    %34 = vector.shape_cast %33 : vector<1x4x128xf32> to vector<4x128xf32>
    %35 = vector.shape_cast %34 : vector<4x128xf32> to vector<1x4x128xf32>
    %36 = vector.broadcast %28 : vector<2x1x128xf32> to vector<2x4x128xf32>
    %37 = vector.broadcast %32 : vector<1x4x128xf32> to vector<2x4x128xf32>
    %38 = arith.mulf %36, %37 : vector<2x4x128xf32>
    %39 = vector.broadcast %29 : vector<2x1x128xf32> to vector<2x4x128xf32>
    %40 = vector.broadcast %35 : vector<1x4x128xf32> to vector<2x4x128xf32>
    %41 = arith.mulf %39, %40 : vector<2x4x128xf32>
    %42 = arith.subf %38, %41 : vector<2x4x128xf32>
    %43 = arith.addf %19, %42 : vector<2x4x128xf32>
    %44 = vector.broadcast %28 : vector<2x1x128xf32> to vector<2x4x128xf32>
    %45 = vector.broadcast %35 : vector<1x4x128xf32> to vector<2x4x128xf32>
    %46 = arith.mulf %44, %45 : vector<2x4x128xf32>
    %47 = vector.broadcast %29 : vector<2x1x128xf32> to vector<2x4x128xf32>
    %48 = vector.broadcast %32 : vector<1x4x128xf32> to vector<2x4x128xf32>
    %49 = arith.mulf %47, %48 : vector<2x4x128xf32>
    %50 = arith.addf %46, %49 : vector<2x4x128xf32>
    %51 = arith.addf %27, %50 : vector<2x4x128xf32>
    %52 = vector.extract_strided_slice %0 {offsets = [0, 2, 0], sizes = [2, 1, 128], strides = [1, 1, 1]} : vector<2x4x128xf32> to vector<2x1x128xf32>
    %53 = vector.extract_strided_slice %1 {offsets = [0, 2, 0], sizes = [2, 1, 128], strides = [1, 1, 1]} : vector<2x4x128xf32> to vector<2x1x128xf32>
    %c2 = arith.constant 2 : index
    %c0_17 = arith.constant 0 : index
    %c0_18 = arith.constant 0 : index
    %54 = vector.load %arg4[%c2, %c0_17, %c0_18] : memref<4x4x128xf32, #tpu.memory_space<vmem>>, vector<1x4x128xf32>
    %55 = vector.shape_cast %54 : vector<1x4x128xf32> to vector<4x128xf32>
    %56 = vector.shape_cast %55 : vector<4x128xf32> to vector<1x4x128xf32>
    %c2_19 = arith.constant 2 : index
    %c0_20 = arith.constant 0 : index
    %c0_21 = arith.constant 0 : index
    %57 = vector.load %arg5[%c2_19, %c0_20, %c0_21] : memref<4x4x128xf32, #tpu.memory_space<vmem>>, vector<1x4x128xf32>
    %58 = vector.shape_cast %57 : vector<1x4x128xf32> to vector<4x128xf32>
    %59 = vector.shape_cast %58 : vector<4x128xf32> to vector<1x4x128xf32>
    %60 = vector.broadcast %52 : vector<2x1x128xf32> to vector<2x4x128xf32>
    %61 = vector.broadcast %56 : vector<1x4x128xf32> to vector<2x4x128xf32>
    %62 = arith.mulf %60, %61 : vector<2x4x128xf32>
    %63 = vector.broadcast %53 : vector<2x1x128xf32> to vector<2x4x128xf32>
    %64 = vector.broadcast %59 : vector<1x4x128xf32> to vector<2x4x128xf32>
    %65 = arith.mulf %63, %64 : vector<2x4x128xf32>
    %66 = arith.subf %62, %65 : vector<2x4x128xf32>
    %67 = arith.addf %43, %66 : vector<2x4x128xf32>
    %68 = vector.broadcast %52 : vector<2x1x128xf32> to vector<2x4x128xf32>
    %69 = vector.broadcast %59 : vector<1x4x128xf32> to vector<2x4x128xf32>
    %70 = arith.mulf %68, %69 : vector<2x4x128xf32>
    %71 = vector.broadcast %53 : vector<2x1x128xf32> to vector<2x4x128xf32>
    %72 = vector.broadcast %56 : vector<1x4x128xf32> to vector<2x4x128xf32>
    %73 = arith.mulf %71, %72 : vector<2x4x128xf32>
    %74 = arith.addf %70, %73 : vector<2x4x128xf32>
    %75 = arith.addf %51, %74 : vector<2x4x128xf32>
    %76 = vector.extract_strided_slice %0 {offsets = [0, 3, 0], sizes = [2, 1, 128], strides = [1, 1, 1]} : vector<2x4x128xf32> to vector<2x1x128xf32>
    %77 = vector.extract_strided_slice %1 {offsets = [0, 3, 0], sizes = [2, 1, 128], strides = [1, 1, 1]} : vector<2x4x128xf32> to vector<2x1x128xf32>
    %c3 = arith.constant 3 : index
    %c0_22 = arith.constant 0 : index
    %c0_23 = arith.constant 0 : index
    %78 = vector.load %arg4[%c3, %c0_22, %c0_23] : memref<4x4x128xf32, #tpu.memory_space<vmem>>, vector<1x4x128xf32>
    %79 = vector.shape_cast %78 : vector<1x4x128xf32> to vector<4x128xf32>
    %80 = vector.shape_cast %79 : vector<4x128xf32> to vector<1x4x128xf32>
    %c3_24 = arith.constant 3 : index
    %c0_25 = arith.constant 0 : index
    %c0_26 = arith.constant 0 : index
    %81 = vector.load %arg5[%c3_24, %c0_25, %c0_26] : memref<4x4x128xf32, #tpu.memory_space<vmem>>, vector<1x4x128xf32>
    %82 = vector.shape_cast %81 : vector<1x4x128xf32> to vector<4x128xf32>
    %83 = vector.shape_cast %82 : vector<4x128xf32> to vector<1x4x128xf32>
    %84 = vector.broadcast %76 : vector<2x1x128xf32> to vector<2x4x128xf32>
    %85 = vector.broadcast %80 : vector<1x4x128xf32> to vector<2x4x128xf32>
    %86 = arith.mulf %84, %85 : vector<2x4x128xf32>
    %87 = vector.broadcast %77 : vector<2x1x128xf32> to vector<2x4x128xf32>
    %88 = vector.broadcast %83 : vector<1x4x128xf32> to vector<2x4x128xf32>
    %89 = arith.mulf %87, %88 : vector<2x4x128xf32>
    %90 = arith.subf %86, %89 : vector<2x4x128xf32>
    %91 = arith.addf %67, %90 : vector<2x4x128xf32>
    %92 = vector.broadcast %76 : vector<2x1x128xf32> to vector<2x4x128xf32>
    %93 = vector.broadcast %83 : vector<1x4x128xf32> to vector<2x4x128xf32>
    %94 = arith.mulf %92, %93 : vector<2x4x128xf32>
    %95 = vector.broadcast %77 : vector<2x1x128xf32> to vector<2x4x128xf32>
    %96 = vector.broadcast %80 : vector<1x4x128xf32> to vector<2x4x128xf32>
    %97 = arith.mulf %95, %96 : vector<2x4x128xf32>
    %98 = arith.addf %94, %97 : vector<2x4x128xf32>
    %99 = arith.addf %75, %98 : vector<2x4x128xf32>
    %c0_27 = arith.constant 0 : index
    %c0_28 = arith.constant 0 : index
    %c0_29 = arith.constant 0 : index
    %100 = vector.load %arg6[%c0_27, %c0_28, %c0_29] : memref<2x4x128xf32, #tpu.memory_space<vmem>>, vector<2x4x128xf32>
    tpu.vector_store %arg6[%c0_27, %c0_28, %c0_29], %91 {strides = array<i32>} : memref<2x4x128xf32, #tpu.memory_space<vmem>>, vector<2x4x128xf32>,
    %c0_30 = arith.constant 0 : index
    %c0_31 = arith.constant 0 : index
    %c0_32 = arith.constant 0 : index
    %101 = vector.load %arg7[%c0_30, %c0_31, %c0_32] : memref<2x4x128xf32, #tpu.memory_space<vmem>>, vector<2x4x128xf32>
    tpu.vector_store %arg7[%c0_30, %c0_31, %c0_32], %99 {strides = array<i32>} : memref<2x4x128xf32, #tpu.memory_space<vmem>>, vector<2x4x128xf32>,
    return
  }
  func.func @transform_0(%arg0: i32, %arg1: i32) -> (i32, i32, i32) {
    %c0_i32 = arith.constant 0 : i32
    %c0_i32_0 = arith.constant 0 : i32
    return %arg1, %c0_i32, %arg0 : i32, i32, i32
  }
  func.func @transform_1(%arg0: i32, %arg1: i32) -> (i32, i32, i32) {
    %c0_i32 = arith.constant 0 : i32
    %c0_i32_0 = arith.constant 0 : i32
    return %arg1, %c0_i32, %arg0 : i32, i32, i32
  }
  func.func @transform_2(%arg0: i32, %arg1: i32) -> (i32, i32, i32) {
    %c0_i32 = arith.constant 0 : i32
    %c0_i32_0 = arith.constant 0 : i32
    %c0_i32_1 = arith.constant 0 : i32
    return %c0_i32, %c0_i32_0, %arg0 : i32, i32, i32
  }
  func.func @transform_3(%arg0: i32, %arg1: i32) -> (i32, i32, i32) {
    %c0_i32 = arith.constant 0 : i32
    %c0_i32_0 = arith.constant 0 : i32
    %c0_i32_1 = arith.constant 0 : i32
    return %c0_i32, %c0_i32_0, %arg0 : i32, i32, i32
  }
  func.func @transform_4(%arg0: i32, %arg1: i32) -> (i32, i32, i32) {
    %c0_i32 = arith.constant 0 : i32
    %c0_i32_0 = arith.constant 0 : i32
    return %arg1, %c0_i32, %arg0 : i32, i32, i32
  }
  func.func @transform_5(%arg0: i32, %arg1: i32) -> (i32, i32, i32) {
    %c0_i32 = arith.constant 0 : i32
    %c0_i32_0 = arith.constant 0 : i32
    return %arg1, %c0_i32, %arg0 : i32, i32, i32
  }
}

module attributes {stable_mosaic.version = 11 : i64} {
  func.func @_linear_add_relu_kernel(%arg0: i32, %arg1: i32, %arg2: memref<2x4x256xf32, #tpu.memory_space<vmem>>, %arg3: memref<4x4xf32, #tpu.memory_space<vmem>>, %arg4: memref<4x1xf32, #tpu.memory_space<vmem>>, %arg5: memref<2x4x256xf32, #tpu.memory_space<vmem>>, %arg6: memref<2x4x256xf32, #tpu.memory_space<vmem>>) attributes {dimension_semantics = [#tpu.dimension_semantics<parallel>, #tpu.dimension_semantics<parallel>], iteration_bounds = array<i64: 1, 1>, scalar_prefetch = 0 : i64, scratch_operands = 0 : i64, tpu.core_type = #tpu.core_type<tc>, window_params = [{transform_indices = @transform_0, window_bounds = array<i64: 2, 4, 256>}, {pipeline_mode = #tpu.pipeline_mode<synchronous>, transform_indices = @transform_1, window_bounds = array<i64: 4, 4>}, {pipeline_mode = #tpu.pipeline_mode<synchronous>, transform_indices = @transform_2, window_bounds = array<i64: 4, 1>}, {transform_indices = @transform_3, window_bounds = array<i64: 2, 4, 256>}, {transform_indices = @transform_4, window_bounds = array<i64: 2, 4, 256>}]} {
    %c0 = arith.constant 0 : index
    %c0_0 = arith.constant 0 : index
    %c0_1 = arith.constant 0 : index
    %0 = vector.load %arg2[%c0, %c0_0, %c0_1] : memref<2x4x256xf32, #tpu.memory_space<vmem>>, vector<2x4x256xf32>
    %c0_2 = arith.constant 0 : index
    %c0_3 = arith.constant 0 : index
    %c0_4 = arith.constant 0 : index
    %1 = vector.load %arg5[%c0_2, %c0_3, %c0_4] : memref<2x4x256xf32, #tpu.memory_space<vmem>>, vector<2x4x256xf32>
    %c0_5 = arith.constant 0 : index
    %c0_6 = arith.constant 0 : index
    %2 = vector.load %arg3[%c0_5, %c0_6] : memref<4x4xf32, #tpu.memory_space<vmem>>, vector<4x4xf32>
    %c0_7 = arith.constant 0 : index
    %c0_8 = arith.constant 0 : index
    %3 = vector.load %arg4[%c0_7, %c0_8] : memref<4x1xf32, #tpu.memory_space<vmem>>, vector<4x1xf32>
    %4 = vector.shape_cast %3 : vector<4x1xf32> to vector<1x4x1xf32>
    %5 = vector.broadcast %4 : vector<1x4x1xf32> to vector<2x4x256xf32>
    %6 = arith.addf %1, %5 : vector<2x4x256xf32>
    %7 = vector.extract_strided_slice %2 {offsets = [0, 0], sizes = [4, 1], strides = [1, 1]} : vector<4x4xf32> to vector<4x1xf32>
    %8 = vector.shape_cast %7 : vector<4x1xf32> to vector<1x4x1xf32>
    %9 = vector.extract_strided_slice %0 {offsets = [0, 0, 0], sizes = [2, 1, 256], strides = [1, 1, 1]} : vector<2x4x256xf32> to vector<2x1x256xf32>
    %10 = vector.broadcast %8 : vector<1x4x1xf32> to vector<2x4x256xf32>
    %11 = vector.broadcast %9 : vector<2x1x256xf32> to vector<2x4x256xf32>
    %12 = arith.mulf %10, %11 : vector<2x4x256xf32>
    %13 = arith.addf %6, %12 : vector<2x4x256xf32>
    %14 = vector.extract_strided_slice %2 {offsets = [0, 1], sizes = [4, 1], strides = [1, 1]} : vector<4x4xf32> to vector<4x1xf32>
    %15 = vector.shape_cast %14 : vector<4x1xf32> to vector<1x4x1xf32>
    %16 = vector.extract_strided_slice %0 {offsets = [0, 1, 0], sizes = [2, 1, 256], strides = [1, 1, 1]} : vector<2x4x256xf32> to vector<2x1x256xf32>
    %17 = vector.broadcast %15 : vector<1x4x1xf32> to vector<2x4x256xf32>
    %18 = vector.broadcast %16 : vector<2x1x256xf32> to vector<2x4x256xf32>
    %19 = arith.mulf %17, %18 : vector<2x4x256xf32>
    %20 = arith.addf %13, %19 : vector<2x4x256xf32>
    %21 = vector.extract_strided_slice %2 {offsets = [0, 2], sizes = [4, 1], strides = [1, 1]} : vector<4x4xf32> to vector<4x1xf32>
    %22 = vector.shape_cast %21 : vector<4x1xf32> to vector<1x4x1xf32>
    %23 = vector.extract_strided_slice %0 {offsets = [0, 2, 0], sizes = [2, 1, 256], strides = [1, 1, 1]} : vector<2x4x256xf32> to vector<2x1x256xf32>
    %24 = vector.broadcast %22 : vector<1x4x1xf32> to vector<2x4x256xf32>
    %25 = vector.broadcast %23 : vector<2x1x256xf32> to vector<2x4x256xf32>
    %26 = arith.mulf %24, %25 : vector<2x4x256xf32>
    %27 = arith.addf %20, %26 : vector<2x4x256xf32>
    %28 = vector.extract_strided_slice %2 {offsets = [0, 3], sizes = [4, 1], strides = [1, 1]} : vector<4x4xf32> to vector<4x1xf32>
    %29 = vector.shape_cast %28 : vector<4x1xf32> to vector<1x4x1xf32>
    %30 = vector.extract_strided_slice %0 {offsets = [0, 3, 0], sizes = [2, 1, 256], strides = [1, 1, 1]} : vector<2x4x256xf32> to vector<2x1x256xf32>
    %31 = vector.broadcast %29 : vector<1x4x1xf32> to vector<2x4x256xf32>
    %32 = vector.broadcast %30 : vector<2x1x256xf32> to vector<2x4x256xf32>
    %33 = arith.mulf %31, %32 : vector<2x4x256xf32>
    %34 = arith.addf %27, %33 : vector<2x4x256xf32>
    %cst = arith.constant 0.000000e+00 : f32
    %35 = vector.broadcast %cst : f32 to vector<2x4x256xf32>
    %36 = arith.maximumf %34, %35 : vector<2x4x256xf32>
    %c0_9 = arith.constant 0 : index
    %c0_10 = arith.constant 0 : index
    %c0_11 = arith.constant 0 : index
    %37 = vector.load %arg6[%c0_9, %c0_10, %c0_11] : memref<2x4x256xf32, #tpu.memory_space<vmem>>, vector<2x4x256xf32>
    tpu.vector_store %arg6[%c0_9, %c0_10, %c0_11], %36 {strides = array<i32>} : memref<2x4x256xf32, #tpu.memory_space<vmem>>, vector<2x4x256xf32>,
    return
  }
  func.func @transform_0(%arg0: i32, %arg1: i32) -> (i32, i32, i32) {
    %c0_i32 = arith.constant 0 : i32
    %c0_i32_0 = arith.constant 0 : i32
    return %arg1, %c0_i32, %arg0 : i32, i32, i32
  }
  func.func @transform_1(%arg0: i32, %arg1: i32) -> (i32, i32) {
    %c0_i32 = arith.constant 0 : i32
    %c0_i32_0 = arith.constant 0 : i32
    %c0_i32_1 = arith.constant 0 : i32
    return %c0_i32, %c0_i32_0 : i32, i32
  }
  func.func @transform_2(%arg0: i32, %arg1: i32) -> (i32, i32) {
    %c0_i32 = arith.constant 0 : i32
    %c0_i32_0 = arith.constant 0 : i32
    %c0_i32_1 = arith.constant 0 : i32
    return %c0_i32, %c0_i32_0 : i32, i32
  }
  func.func @transform_3(%arg0: i32, %arg1: i32) -> (i32, i32, i32) {
    %c0_i32 = arith.constant 0 : i32
    %c0_i32_0 = arith.constant 0 : i32
    return %arg1, %c0_i32, %arg0 : i32, i32, i32
  }
  func.func @transform_4(%arg0: i32, %arg1: i32) -> (i32, i32, i32) {
    %c0_i32 = arith.constant 0 : i32
    %c0_i32_0 = arith.constant 0 : i32
    return %arg1, %c0_i32, %arg0 : i32, i32, i32
  }
}

</mosaic_0001>

<bundles_post_ra>
// kernel: fno_block_forward.2
= control target key start
LH: loop header
LB: loop body
LE: loop exit
PB: predicated region body
PF: predicated region fallthrough
CT: control target
= control target key end

     0   :  { %s267_s0 = inlined_call_operand.vmem [shape: f32[2,4,128], index: 0, kind: input, shape index: {}]   ;;  %s268_s1 = inlined_call_operand.vmem [shape: f32[2,4,128], index: 1, kind: input, shape index: {}]   ;;  %s269_s2 = inlined_call_operand.vmem [shape: f32[4,4,128], index: 2, kind: input, shape index: {}]   ;;  %s270_s3 = inlined_call_operand.vmem [shape: f32[4,4,128], index: 3, kind: input, shape index: {}]   ;;  %s271_s4 = inlined_call_operand.vmem [shape: f32[2,4,128], index: 4, kind: output, shape index: {0}]   ;;  %s272_s5 = inlined_call_operand.vmem [shape: f32[2,4,128], index: 5, kind: output, shape index: {1}]  }
   0x1   :  { %v168_v0 = vld [vmem:[%s267_s0] sm:$0xf]  ;;  %v190_v6 = vld [vmem:[%s269_s2 + $0x4] sm:$0xf]  ;;  %v202_v10 = vld [vmem:[%s269_s2 + $0x8] sm:$0xf] }
   0x2   :  { %v173_v1 = vld [vmem:[%s268_s1] sm:$0xf]  ;;  %v25_v4 = vperm.slane %v168_v0, 0  ;;  %v195_v7 = vld [vmem:[%s270_s3 + $0x4] sm:$0xf]  ;;  %v49_v8 = vperm.slane %v168_v0, 1 }
   0x3   :  { %v178_v2 = vld [vmem:[%s269_s2] sm:$0xf]  ;;  %v29_v5 = vperm.slane %v173_v1, 0  ;;  %v53_v9 = vperm.slane %v173_v1, 1  ;;  %v209_v13 = vld [vmem:[%s270_s3 + $0x8] sm:$0xf] }
   0x4   :  { %v183_v3 = vld [vmem:[%s270_s3] sm:$0xf]  ;;  %v27_v11 = vmul.f32 %v25_v4, %v178_v2  ;;  %v73_v14 = vperm.slane %v168_v0, 2  ;;  %v77_v15 = vperm.slane %v173_v1, 2  ;;  %v216_v16 = vld [vmem:[%s269_s2 + $0xc] sm:$0xf]  ;;  %v51_v17 = vmul.f32 %v190_v6, %v49_v8 }
   0x5   :  { %v31_v12 = vmul.f32 %v29_v5, %v183_v3  ;;  %v55_v18 = vmul.f32 %v195_v7, %v53_v9  ;;  %v134_v19 = vld [vmem:[%s270_s3 + $0xc] sm:$0xf]  ;;  %v97_v20 = vperm.slane %v168_v0, 3  ;;  %v101_v21 = vperm.slane %v173_v1, 3  ;;  %v20_v22 = vld [vmem:[%s267_s0 + $0x4] sm:$0xf] }
   0x6   :  { %v75_v24 = vmul.f32 %v202_v10, %v73_v14  ;;  %v79_v25 = vmul.f32 %v209_v13, %v77_v15  ;;  %v22_v26 = vld [vmem:[%s268_s1 + $0x4] sm:$0xf]  ;;  %v26_v27 = vperm.slane %v20_v22, 0  ;;  %v50_v34 = vperm.slane %v20_v22, 1 }
   0x7   :  { %v33_v23 = vsub.f32 %v27_v11, %v31_v12  ;;  %v57_v28 = vsub.f32 %v51_v17, %v55_v18  ;;  %v99_v29 = vmul.f32 %v216_v16, %v97_v20  ;;  %v103_v30 = vmul.f32 %v134_v19, %v101_v21 }
   0x8   :  { %v30_v31 = vperm.slane %v22_v26, 0  ;;  %v81_v32 = vsub.f32 %v75_v24, %v79_v25  ;;  %v28_v33 = vmul.f32 %v26_v27, %v178_v2  ;;  %v54_v35 = vperm.slane %v22_v26, 1 }
   0x9   :  { %v59_v36 = vadd.f32 %v57_v28, %v33_v23  ;;  %v105_v37 = vsub.f32 %v99_v29, %v103_v30  ;;  %v74_v39 = vperm.slane %v20_v22, 2  ;;  %v52_v40 = vmul.f32 %v190_v6, %v50_v34 }
   0xa   :  { %v32_v38 = vmul.f32 %v30_v31, %v183_v3  ;;  %v56_v41 = vmul.f32 %v195_v7, %v54_v35  ;;  %v78_v42 = vperm.slane %v22_v26, 2  ;;  %v98_v43 = vperm.slane %v20_v22, 3 }
   0xb   :  { %v83_v44 = vadd.f32 %v81_v32, %v59_v36  ;;  %v76_v46 = vmul.f32 %v202_v10, %v74_v39  ;;  %v102_v47 = vperm.slane %v22_v26, 3  ;;  %v37_v51 = vmul.f32 %v25_v4, %v183_v3 }
   0xc   :  { %v34_v45 = vsub.f32 %v28_v33, %v32_v38  ;;  %v58_v48 = vsub.f32 %v52_v40, %v56_v41  ;;  %v80_v49 = vmul.f32 %v209_v13, %v78_v42  ;;  %v100_v50 = vmul.f32 %v216_v16, %v98_v43 }
   0xd   :  { %v107_v52 = vadd.f32 %v105_v37, %v83_v44  ;;  %v104_v53 = vmul.f32 %v134_v19, %v102_v47  ;;  %v39_v54 = vmul.f32 %v29_v5, %v178_v2  ;;  %v61_v55 = vmul.f32 %v195_v7, %v49_v8 }
   0xe   :  { %v60_v56 = vadd.f32 %v58_v48, %v34_v45  ;;  %v82_v57 = vsub.f32 %v76_v46, %v80_v49  ;;  %v63_v58 = vmul.f32 %v190_v6, %v53_v9  ;;  %v85_v59 = vmul.f32 %v209_v13, %v73_v14 }
   0xf   :  { %117 = vst [vmem:[%s271_s4] sm:$0xf] %v107_v52  ;;  %v106_v60 = vsub.f32 %v100_v50, %v104_v53  ;;  %v41_v61 = vadd.f32 %v39_v54, %v37_v51  ;;  %v87_v62 = vmul.f32 %v202_v10, %v77_v15  ;;  %v109_v63 = vmul.f32 %v134_v19, %v97_v20 }
  0x10   :  { %v84_v0 = vadd.f32 %v82_v57, %v60_v56  ;;  %v65_v1 = vadd.f32 %v63_v58, %v61_v55  ;;  %v111_v4 = vmul.f32 %v216_v16, %v101_v21  ;;  %v38_v5 = vmul.f32 %v26_v27, %v183_v3 }
  0x11   :  { %v89_v8 = vadd.f32 %v87_v62, %v85_v59  ;;  %v40_v9 = vmul.f32 %v30_v31, %v178_v2  ;;  %v62_v11 = vmul.f32 %v195_v7, %v50_v34  ;;  %v64_v12 = vmul.f32 %v190_v6, %v54_v35 }
  0x12   :  { %v108_v14 = vadd.f32 %v106_v60, %v84_v0  ;;  %v67_v17 = vadd.f32 %v65_v1, %v41_v61  ;;  %v113_v18 = vadd.f32 %v111_v4, %v109_v63  ;;  %v86_v22 = vmul.f32 %v209_v13, %v74_v39 }
  0x13   :  { %v42_v15 = vadd.f32 %v40_v9, %v38_v5  ;;  %v66_v20 = vadd.f32 %v64_v12, %v62_v11  ;;  %v88_v23 = vmul.f32 %v202_v10, %v78_v42  ;;  %v110_v24 = vmul.f32 %v134_v19, %v98_v43 }
  0x14   :  { %118 = vst [vmem:[%s271_s4 + $0x4] sm:$0xf] %v108_v14  ;;  %v91_v3 = vadd.f32 %v89_v8, %v67_v17  ;;  %v112_v2 = vmul.f32 %v216_v16, %v102_v47 }
  0x15   :  { %v68_v7 = vadd.f32 %v66_v20, %v42_v15  ;;  %v90_v21 = vadd.f32 %v88_v23, %v86_v22 }
  0x16   :  { %v115_v6 = vadd.f32 %v113_v18, %v91_v3  ;;  %v114_v25 = vadd.f32 %v112_v2, %v110_v24 }
  0x17   :  { %v92_v26 = vadd.f32 %v90_v21, %v68_v7 }
  0x18   :  { %119 = vst [vmem:[%s272_s5] sm:$0xf] %v115_v6 }
  0x19   :  { %v116_v13 = vadd.f32 %v114_v25, %v92_v26 }
  0x1b   :  { %120 = vst [vmem:[%s272_s5 + $0x4] sm:$0xf] %v116_v13 }

// kernel: reverse.0
= control target key start
LH: loop header
LB: loop body
LE: loop exit
PB: predicated region body
PF: predicated region fallthrough
CT: control target
= control target key end

     0   :  { %v72_v3 = vlaneseq  ;;  %v65_v6 = vld [vmem:[#allocation0 + $0x7] ss:$-1 sm:$0xff]  ;;  %v79_v8 = vld [vmem:[#allocation0 + $0x17] ss:$-1 sm:$0xff]  ;;  %s331_s0 = inlined_call_operand.vmem [shape: f32[2,4,16,7], index: 0, kind: input, shape index: {}]   ;;  %s332_s1 = inlined_call_operand.vmem [shape: f32[2,4,16,7], index: 1, kind: output, shape index: {}]  }
   0x1   :  { %v45_v0 = vld [vmem:[%s331_s0] sm:$0xff]  ;;  %v47_v1 = vld [vmem:[%s331_s0 + $0x8] sm:$0xff]  ;;  %v49_v2 = vld [vmem:[%s331_s0 + $0x10] sm:$0xff]  ;;  %v66_v12 = vrot.slane %v65_v6, 1  ;;  %v80_v13 = vrot.slane %v79_v8, 1 }
   0x2   :  { %46 = vst [vmem:[#allocation0 + $0x8] sm:$0xff] %v45_v0  ;;  %v51_v4 = vld [vmem:[%s331_s0 + $0x18] sm:$0xff]  ;;  %v53_v5 = vld [vmem:[%s331_s0 + $0x20] sm:$0xff]  ;;  %v55_v7 = vld [vmem:[%s331_s0 + $0x28] sm:$0xff]  ;;  %v73_v10 = vshrl.u32 %v72_v3, 7 }
   0x3   :  { %48 = vst [vmem:[#allocation0 + $0x18] sm:$0xff] %v47_v1  ;;  %v57_v9 = vld [vmem:[%s331_s0 + $0x30] sm:$0xff]  ;;  %v59_v11 = vld [vmem:[%s331_s0 + $0x38] sm:$0xff]  ;;  %v93_v14 = vld [vmem:[#allocation0 + $0x27] ss:$-1 sm:$0xff] }
   0x4   :  { %50 = vst [vmem:[#allocation0 + $0x28] sm:$0xff] %v49_v2  ;;  %vm74_vm0 = vcmp.lt.s32.totalorder %v73_v10, 7  ;;  %v107_v16 = vld [vmem:[#allocation0 + $0x37] ss:$-1 sm:$0xff]  ;;  %v94_v19 = vrot.slane %v93_v14, 1 }
   0x5   :  { %52 = vst [vmem:[#allocation0 + $0x38] sm:$0xff] %v51_v4  ;;  %v121_v22 = vld [vmem:[#allocation0 + $0x47] ss:$-1 sm:$0xff]  ;;  %v108_v24 = vrot.slane %v107_v16, 1  ;;  %v135_v28 = vld [vmem:[#allocation0 + $0x57] ss:$-1 sm:$0xff] }
   0x6   :  { %54 = vst [vmem:[#allocation0 + $0x48] sm:$0xff] %v53_v5  ;;  %v122_v29 = vrot.slane %v121_v22, 1  ;;  %v149_v32 = vld [vmem:[#allocation0 + $0x67] ss:$-1 sm:$0xff]  ;;  %v136_v33 = vrot.slane %v135_v28, 1 }
   0x7   :  { %56 = vst [vmem:[#allocation0 + $0x58] sm:$0xff] %v55_v7  ;;  %v163_v36 = vld [vmem:[#allocation0 + $0x77] ss:$-1 sm:$0xff]  ;;  %v150_v37 = vrot.slane %v149_v32, 1 }
   0x8   :  { %58 = vst [vmem:[#allocation0 + $0x68] sm:$0xff] %v57_v9  ;;  %v164_v40 = vrot.slane %v163_v36, 1 }
   0x9   :  { %60 = vst [vmem:[#allocation0 + $0x78] sm:$0xff] %v59_v11  ;;  %v70_v15 = vld [vmem:[#allocation0 + $0xf] ss:$-1 sm:$0xff] }
   0xa   :  { %67 = vst [vmem:[#allocation1] sm:$0xff] %v66_v12  ;;  %v71_v17 = vrot.slane %v70_v15, 1  ;;  %v84_v18 = vld [vmem:[#allocation0 + $0x1f] ss:$-1 sm:$0xff] }
   0xb   :  { %81 = vst [vmem:[#allocation1 + $0x8] sm:$0xff] %v80_v13  ;;  %v85_v20 = vrot.slane %v84_v18, 1  ;;  %v98_v21 = vld [vmem:[#allocation0 + $0x2f] ss:$-1 sm:$0xff] }
   0xc   :  { %75 = vst.msk [vmem:[#allocation1] sm:$0xff] %vm74_vm0, %v71_v17  ;;  %v99_v23 = vrot.slane %v98_v21, 1  ;;  %v112_v25 = vld [vmem:[#allocation0 + $0x3f] ss:$-1 sm:$0xff] }
   0xd   :  { %89 = vst.msk [vmem:[#allocation1 + $0x8] sm:$0xff] %vm74_vm0, %v85_v20  ;;  %v113_v26 = vrot.slane %v112_v25, 1  ;;  %v126_v27 = vld [vmem:[#allocation0 + $0x4f] ss:$-1 sm:$0xff] }
   0xe   :  { %95 = vst [vmem:[#allocation1 + $0x10] sm:$0xff] %v94_v19  ;;  %v140_v30 = vld [vmem:[#allocation0 + $0x5f] ss:$-1 sm:$0xff]  ;;  %v127_v31 = vrot.slane %v126_v27, 1 }
   0xf   :  { %103 = vst.msk [vmem:[#allocation1 + $0x10] sm:$0xff] %vm74_vm0, %v99_v23  ;;  %v154_v34 = vld [vmem:[#allocation0 + $0x6f] ss:$-1 sm:$0xff]  ;;  %v141_v35 = vrot.slane %v140_v30, 1 }
  0x10   :  { %109 = vst [vmem:[#allocation1 + $0x18] sm:$0xff] %v108_v24  ;;  %v168_v38 = vld [vmem:[#allocation0 + $0x7f] ss:$-1 sm:$0xff]  ;;  %v155_v39 = vrot.slane %v154_v34, 1 }
  0x11   :  { %117 = vst.msk [vmem:[#allocation1 + $0x18] sm:$0xff] %vm74_vm0, %v113_v26  ;;  %v169_v41 = vrot.slane %v168_v38, 1 }
  0x12   :  { %123 = vst [vmem:[#allocation1 + $0x20] sm:$0xff] %v122_v29 }
  0x13   :  { %131 = vst.msk [vmem:[#allocation1 + $0x20] sm:$0xff] %vm74_vm0, %v127_v31  ;;  %v216_v42 = vld [vmem:[#allocation1] sm:$0xff] }
  0x14   :  { %137 = vst [vmem:[#allocation1 + $0x28] sm:$0xff] %v136_v33  ;;  %v218_v43 = vld [vmem:[#allocation1 + $0x8] sm:$0xff] }
  0x15   :  { %145 = vst.msk [vmem:[#allocation1 + $0x28] sm:$0xff] %vm74_vm0, %v141_v35 }
  0x16   :  { %151 = vst [vmem:[#allocation1 + $0x30] sm:$0xff] %v150_v37  ;;  %v220_v44 = vld [vmem:[#allocation1 + $0x10] sm:$0xff] }
  0x17   :  { %159 = vst.msk [vmem:[#allocation1 + $0x30] sm:$0xff] %vm74_vm0, %v155_v39 }
  0x18   :  { %165 = vst [vmem:[#allocation1 + $0x38] sm:$0xff] %v164_v40  ;;  %v222_v45 = vld [vmem:[#allocation1 + $0x18] sm:$0xff] }
  0x19   :  { %173 = vst.msk [vmem:[#allocation1 + $0x38] sm:$0xff] %vm74_vm0, %v169_v41 }
  0x1a   :  { %217 = vst [vmem:[%s332_s1] sm:$0xff] %v216_v42  ;;  %v224_v46 = vld [vmem:[#allocation1 + $0x20] sm:$0xff] }
  0x1b   :  { %219 = vst [vmem:[%s332_s1 + $0x8] sm:$0xff] %v218_v43 }
  0x1c   :  { %221 = vst [vmem:[%s332_s1 + $0x10] sm:$0xff] %v220_v44  ;;  %v226_v47 = vld [vmem:[#allocation1 + $0x28] sm:$0xff] }
  0x1d   :  { %223 = vst [vmem:[%s332_s1 + $0x18] sm:$0xff] %v222_v45 }
  0x1e   :  { %225 = vst [vmem:[%s332_s1 + $0x20] sm:$0xff] %v224_v46  ;;  %v228_v48 = vld [vmem:[#allocation1 + $0x30] sm:$0xff] }
  0x1f   :  { %227 = vst [vmem:[%s332_s1 + $0x28] sm:$0xff] %v226_v47 }
  0x20   :  { %229 = vst [vmem:[%s332_s1 + $0x30] sm:$0xff] %v228_v48  ;;  %v230_v49 = vld [vmem:[#allocation1 + $0x38] sm:$0xff] }
  0x21   :  { %231 = vst [vmem:[%s332_s1 + $0x38] sm:$0xff] %v230_v49 }

// kernel: fno_block_forward.3
= control target key start
LH: loop header
LB: loop body
LE: loop exit
PB: predicated region body
PF: predicated region fallthrough
CT: control target
= control target key end

     0   :  { %v184_v0 = vmov 1   ;;  %v185_v1 = vmov 0   ;;  %v186_v3 = vmov 3   ;;  %v187_v5 = vmov 2   ;;  %s246_s1 = inlined_call_operand.vmem [shape: f32[4,4], index: 1, kind: input, shape index: {}]   ;;  %s247_s2 = inlined_call_operand.vmem [shape: f32[4,1], index: 2, kind: input, shape index: {}]   ;;  %s248_s0 = inlined_call_operand.vmem [shape: f32[2,4,256], index: 0, kind: input, shape index: {}]   ;;  %s249_s3 = inlined_call_operand.vmem [shape: f32[2,4,256], index: 3, kind: input, shape index: {}]   ;;  %s250_s4 = inlined_call_operand.vmem [shape: f32[2,4,256], index: 4, kind: output, shape index: {}]  }
   0x1   :  { %180 = vset.pattern.permute.xlu1 %v184_v0  ;;  %179 = vset.pattern.permute.xlu0 %v185_v1  ;;  %v21_v2 = vld [vmem:[%s246_s1] sm:$0xf]  ;;  %v18_v7 = vld [vmem:[%s248_s0 + $0x8] sm:$0xff]  ;;  %v188_v24 = vmov 839922192   ;;  %vm63_vm0 = vcmask 1043456  }
   0x2   :  { %71 = vperm.xlu1 %180, %v21_v2   ;;  %36 = vperm.xlu0 %179, %v21_v2   ;;  %v22_v4 = vld [vmem:[%s247_s2] sm:$0xf]  ;;  %v44_v9 = vperm.slane %v18_v7, 4  ;;  %v77_v11 = vperm.slane %v18_v7, 5  ;;  %v43_v13 = vperm.slane %v18_v7, 0  ;;  %v76_v18 = vperm.slane %v18_v7, 1 }
   0x3   :  { %182 = vset.pattern.permute.xlu2 %v186_v3  ;;  %v17_v6 = vld [vmem:[%s248_s0] sm:$0xff]  ;;  %v141_v21 = vperm.slane %v18_v7, 7  ;;  %v28_v25 = vunpack.c.l.s4 %v188_v24  ;;  %v109_v30 = vperm.slane %v18_v7, 6  ;;  %v108_v33 = vperm.slane %v18_v7, 2  ;;  %v20_v53 = vld [vmem:[%s249_s3 + $0x8] sm:$0xff] }
   0x4   :  { %135 = vperm.xlu2 %182, %v21_v2   ;;  %v42_v8 = vperm.slane %v17_v6, 4  ;;  %v75_v10 = vperm.slane %v17_v6, 5  ;;  %v41_v12 = vperm.slane %v17_v6, 0  ;;  %v52_v15 = vperm.slane %v44_v9, 0  ;;  %v19_v52 = vld [vmem:[%s249_s3] sm:$0xff] }
   0x5   :  { %v74_v17 = vperm.slane %v17_v6, 1  ;;  %v139_v20 = vperm.slane %v17_v6, 7  ;;  %v85_v23 = vperm.slane %v77_v11, 1  ;;  %v107_v26 = vperm.slane %v17_v6, 6 }
   0x6   :  { %v50_v14 = vperm.slane %v42_v8, 0  ;;  %v83_v22 = vperm.slane %v75_v10, 1  ;;  %v49_v27 = vperm.slane %v41_v12, 0  ;;  %v51_v28 = vperm.slane %v43_v13, 0 }
   0x7   :  { %v106_v29 = vperm.slane %v17_v6, 2  ;;  %v138_v34 = vperm.slane %v17_v6, 3  ;;  %v82_v35 = vperm.slane %v74_v17, 1  ;;  %v140_v36 = vperm.slane %v18_v7, 3 }
   0x8   :  { %v147_v37 = vperm.slane %v139_v20, 3  ;;  %v149_v38 = vperm.slane %v141_v21, 3  ;;  %v84_v39 = vperm.slane %v76_v18, 1  ;;  %v29_v40 = vunpack.c.0.s8 %v28_v25 }
   0x9   :  { %v115_v41 = vperm.slane %v107_v26, 2  ;;  %v114_v45 = vperm.slane %v106_v29, 2  ;;  %v117_v46 = vperm.slane %v109_v30, 2  ;;  %v116_v49 = vperm.slane %v108_v33, 2 }
   0xa   :  { %181 = vset.pattern.permute.xlu1 %v187_v5  ;;  %25 = vperm.xlu0 %179, %v22_v4   ;;  %v146_v50 = vperm.slane %v138_v34, 3  ;;  %v148_v55 = vperm.slane %v140_v36, 3 }
   0xb   :  { %103 = vperm.xlu1 %181, %v21_v2  }
  0x12   :  { %183 = vset.pattern.permute.xlu0 %v186_v3 }
  0x5e   :  { %v136_v42 = vpop.permute.xlu2 %135 }
  0x5f   :  { %v151_v56 = vmul.f32 %v147_v37, %v136_v42  ;;  %v153_v57 = vmul.f32 %v149_v38, %v136_v42  ;;  %v150_v13 = vmul.f32 %v146_v50, %v136_v42 }
  0x61   :  { %v158_v17 = vrot.slane %v151_v56, 4  ;;  %v159_v18 = vrot.slane %v153_v57, 4 }
  0x63   :  { %v160_v25 = vsel %vm63_vm0, %v150_v13, %v158_v17 }
  0x74   :  { %v72_v16 = vpop.permute.xlu1 %71  ;;  %v37_v19 = vpop.permute.xlu0 %36 }
  0x75   :  { %v54_v31 = vmul.f32 %v50_v14, %v37_v19  ;;  %v56_v32 = vmul.f32 %v52_v15, %v37_v19  ;;  %v87_v43 = vmul.f32 %v83_v22, %v72_v16  ;;  %v89_v44 = vmul.f32 %v85_v23, %v72_v16 }
  0x76   :  { %v86_v51 = vmul.f32 %v82_v35, %v72_v16  ;;  %v88_v58 = vmul.f32 %v84_v39, %v72_v16  ;;  %v53_v59 = vmul.f32 %v49_v27, %v37_v19  ;;  %v55_v60 = vmul.f32 %v51_v28, %v37_v19 }
  0x77   :  { %v61_v47 = vrot.slane %v54_v31, 4  ;;  %v62_v48 = vrot.slane %v56_v32, 4  ;;  %v94_v63 = vrot.slane %v87_v43, 4  ;;  %v95_v0 = vrot.slane %v89_v44, 4 }
  0x78   :  { %v152_v14 = vmul.f32 %v148_v55, %v136_v42 }
  0x79   :  { %v64_v5 = vsel %vm63_vm0, %v53_v59, %v61_v47  ;;  %v65_v6 = vsel %vm63_vm0, %v55_v60, %v62_v48  ;;  %v96_v15 = vsel %vm63_vm0, %v86_v51, %v94_v63  ;;  %v97_v16 = vsel %vm63_vm0, %v88_v58, %v95_v0 }
  0x7a   :  { %v161_v26 = vsel %vm63_vm0, %v152_v14, %v159_v18 }
  0x7c   :  { %v26_v54 = vpop.permute.xlu0 %25 }
  0x7d   :  { %v30_v61 = vperm.slane %v26_v54, %v29_v40  ;;  %v104_v62 = vpop.permute.xlu1 %103 }
  0x7e   :  { %v119_v1 = vmul.f32 %v115_v41, %v104_v62  ;;  %v121_v2 = vmul.f32 %v117_v46, %v104_v62  ;;  %v118_v7 = vmul.f32 %v114_v45, %v104_v62  ;;  %v120_v8 = vmul.f32 %v116_v49, %v104_v62 }
  0x7f   :  { %v32_v3 = vadd.f32 %v30_v61, %v19_v52  ;;  %v33_v4 = vadd.f32 %v30_v61, %v20_v53 }
  0x80   :  { %v126_v9 = vrot.slane %v119_v1, 4  ;;  %v127_v10 = vrot.slane %v121_v2, 4 }
  0x81   :  { %v68_v11 = vadd.f32 %v64_v5, %v32_v3  ;;  %v69_v12 = vadd.f32 %v65_v6, %v33_v4 }
  0x82   :  { %v128_v21 = vsel %vm63_vm0, %v118_v7, %v126_v9  ;;  %v129_v22 = vsel %vm63_vm0, %v120_v8, %v127_v10 }
  0x83   :  { %v100_v19 = vadd.f32 %v96_v15, %v68_v11  ;;  %v101_v20 = vadd.f32 %v97_v16, %v69_v12 }
  0x85   :  { %v132_v23 = vadd.f32 %v128_v21, %v100_v19  ;;  %v133_v24 = vadd.f32 %v129_v22, %v101_v20 }
  0x87   :  { %v164_v27 = vadd.f32 %v160_v25, %v132_v23  ;;  %v165_v28 = vadd.f32 %v161_v26, %v133_v24 }
  0x89   :  { %v166_v29 = vmax.f32 %v164_v27, 0.0  ;;  %v167_v30 = vmax.f32 %v165_v28, 0.0 }
  0x8b   :  { %168 = vst [vmem:[%s250_s4] sm:$0xff] %v166_v29 }
  0x8c   :  { %169 = vst [vmem:[%s250_s4 + $0x8] sm:$0xff] %v167_v30 }

</bundles_post_ra>
